<compile_context>
chip_gen: v7x
topology: tpu7x:2x2x1
jax: 0.10.0
libtpu: 0.0.40
codegen_flags: <defaults>
</compile_context>

<pallas_src>
import functools

import numpy as np
import jax
import jax.numpy as jnp
from jax import lax
from jax.experimental import pallas as pl
from jax.experimental.pallas import tpu as pltpu

# ----------------------------- model config ---------------------------------
GROWTH = 32
BLOCK_CONFIG = (6, 12, 32, 32)      # DenseNet-169
NUM_INIT = 64
BN_SIZE = 4
NUM_CLASSES = 102
NUM_HOG = 1568

VMEM_LIMIT = 32 * 1024 * 1024       # explicit, safe on v5e/v6e/v7x


# ------------------------------- helpers -------------------------------------
def _round_up(x, m):
    return ((x + m - 1) // m) * m


def _pick_tile(n, cands):
    for c in cands:
        if n % c == 0:
            return c
    return n


# --------------------- fused conv-as-matmul Pallas kernel --------------------
def _conv_mm_kernel(a_ref, b_ref, ps_ref, pb_ref, qs_ref, qb_ref, o_ref, acc_ref,
                    *, pre_affine, pre_relu, post_affine, post_relu):
    """(TM,TN) output tile, K reduced over grid axis 2.

    prologue (per input channel, f32):   a = relu(a*ps + pb)    [norm1/transition-norm]
    epilogue (per output channel, f32):  o = relu(acc*qs + qb)  [norm0/norm2]
    MXU runs bf16 x bf16 with f32 accumulation.
    """
    @pl.when(pl.program_id(2) == 0)
    def _():
        acc_ref[...] = jnp.zeros_like(acc_ref)

    if pre_affine or pre_relu:
        a = a_ref[...].astype(jnp.float32)
        if pre_affine:
            a = a * ps_ref[...] + pb_ref[...]
        if pre_relu:
            a = jnp.maximum(a, 0.0)
        a = a.astype(jnp.bfloat16)
    else:
        a = a_ref[...]
    acc_ref[...] += jnp.dot(a, b_ref[...], preferred_element_type=jnp.float32)

    @pl.when(pl.program_id(2) == pl.num_programs(2) - 1)
    def _():
        y = acc_ref[...]
        if post_affine:
            y = y * qs_ref[...] + qb_ref[...]
        if post_relu:
            y = jnp.maximum(y, 0.0)
        o_ref[...] = y.astype(o_ref.dtype)


@functools.lru_cache(maxsize=None)
def _conv_mm_call(Mp, Kp, Np, TM, TK, TN, pre_affine, pre_relu, post_affine, post_relu):
    kern = functools.partial(_conv_mm_kernel, pre_affine=pre_affine,
                             pre_relu=pre_relu, post_affine=post_affine,
                             post_relu=post_relu)
    return jax.jit(pl.pallas_call(
        kern,
        out_shape=jax.ShapeDtypeStruct((Mp, Np), jnp.bfloat16),
        grid_spec=pltpu.PrefetchScalarGridSpec(
            num_scalar_prefetch=0,
            grid=(Mp // TM, Np // TN, Kp // TK),
            in_specs=[pl.BlockSpec((TM, TK), lambda i, j, k: (i, k)),
                      pl.BlockSpec((TK, TN), lambda i, j, k: (k, j)),
                      pl.BlockSpec((1, TK), lambda i, j, k: (0, k)),
                      pl.BlockSpec((1, TK), lambda i, j, k: (0, k)),
                      pl.BlockSpec((1, TN), lambda i, j, k: (0, j)),
                      pl.BlockSpec((1, TN), lambda i, j, k: (0, j))],
            out_specs=pl.BlockSpec((TM, TN), lambda i, j, k: (i, j)),
            scratch_shapes=[pltpu.VMEM((TM, TN), jnp.float32)]),
        compiler_params=pltpu.CompilerParams(
            dimension_semantics=("parallel", "parallel", "arbitrary"),
            vmem_limit_bytes=VMEM_LIMIT),
    ))


def matmul_fused(a, b, pre=None, pre_relu=False, post=None, post_relu=False):
    """out = epilogue(prologue(a) @ b), padded only to tile multiples."""
    M, K = a.shape
    K2, N = b.shape
    assert K == K2
    Mp = _round_up(M, 16)
    Kp = _round_up(K, 256)          # bucket K to 256 -> few shape classes
    Np = _round_up(N, 128)
    TM = _pick_tile(Mp, (512, 256, 128, 64, 32, 16))
    TK = 512 if Kp % 512 == 0 else 256
    TN = 256 if Np % 256 == 0 else 128   # >=256 when possible (v6e/v7x MXU width)

    a_p = jnp.pad(a.astype(jnp.bfloat16), ((0, Mp - M), (0, Kp - K)))
    b_p = jnp.pad(b.astype(jnp.bfloat16), ((0, Kp - K), (0, Np - N)))

    def _vec(sb, length, padded):
        if sb is None:
            z = jnp.zeros((1, padded), jnp.float32)
            return z, z
        s, t = sb
        return (jnp.pad(s.reshape(1, length).astype(jnp.float32),
                        ((0, 0), (0, padded - length))),
                jnp.pad(t.reshape(1, length).astype(jnp.float32),
                        ((0, 0), (0, padded - length))))

    ps, pb = _vec(pre, K, Kp)
    qs, qb = _vec(post, N, Np)
    fn = _conv_mm_call(Mp, Kp, Np, TM, TK, TN,
                       pre is not None, pre_relu, post is not None, post_relu)
    return fn(a_p, b_p, ps, pb, qs, qb)[:M, :N]


def conv2d_fused(x, w, stride, padding, pre=None, pre_relu=False,
                 post=None, post_relu=False):
    """x: (B,H,W,C) bf16 NHWC; w: (Cout,Cin,kh,kw) OIHW f32 (PyTorch layout).

    pre  = folded-BN (scale,bias) per *input* channel; only allowed for 1x1,
           pad-0 convs so spatial zero-padding is never touched by the affine.
    post = folded-BN (scale,bias) per *output* channel.
    """
    B, H, W, C = x.shape
    Cout, Cin, kh, kw = w.shape
    assert C == Cin
    assert pre is None or (kh == 1 and kw == 1 and padding == 0)
    Ho = (H + 2 * padding - kh) // stride + 1
    Wo = (W + 2 * padding - kw) // stride + 1
    if kh == 1 and kw == 1 and stride == 1 and padding == 0:
        a = x.reshape(B * H * W, C)
    else:
        # TODO(synk): im2col taps are plain-JAX strided slices (bf16, tile-padded
        #             only), not yet expressed as shifted index_maps on the input.
        xp = jnp.pad(x, ((0, 0), (padding, padding), (padding, padding), (0, 0)))
        cols = []
        for di in range(kh):
            for dj in range(kw):
                cols.append(lax.slice(
                    xp, (0, di, dj, 0),
                    (B, di + (Ho - 1) * stride + 1, dj + (Wo - 1) * stride + 1, C),
                    (1, stride, stride, 1)))
        a = jnp.concatenate(cols, axis=-1).reshape(B * Ho * Wo, kh * kw * C)
    wmat = jnp.transpose(w, (2, 3, 1, 0)).reshape(kh * kw * Cin, Cout)
    y = matmul_fused(a, wmat, pre=pre, pre_relu=pre_relu,
                     post=post, post_relu=post_relu)
    return y.reshape(B, Ho, Wo, Cout)


# --------------------------- fused head Pallas kernel ------------------------
def _head_kernel(feat_ref, s_ref, t_ref, hog_ref, wf_ref, wh_ref, b_ref, o_ref,
                 *, n_spatial):
    # fused: norm5 -> ReLU -> global average pool (in-kernel reduction)
    #        -> [pooled, hog] @ [Wf; Wh] + b
    f = feat_ref[...].astype(jnp.float32) * s_ref[...] + t_ref[...]
    f = jnp.maximum(f, 0.0)
    if n_spatial == 1:
        pooled = f
    else:
        bp = hog_ref.shape[0]
        pooled = (f.reshape(bp, n_spatial, f.shape[-1]).sum(axis=1)
                  * (1.0 / n_spatial))
    out = jnp.dot(pooled, wf_ref[...], preferred_element_type=jnp.float32)
    out = out + jnp.dot(hog_ref[...], wh_ref[...],
                        preferred_element_type=jnp.float32)
    o_ref[...] = out + b_ref[...]


@functools.lru_cache(maxsize=None)
def _head_call(Bp, S, Cp, Kh, Np):
    kern = functools.partial(_head_kernel, n_spatial=S)
    return jax.jit(pl.pallas_call(
        kern,
        out_shape=jax.ShapeDtypeStruct((Bp, Np), jnp.float32),
        grid_spec=pltpu.PrefetchScalarGridSpec(
            num_scalar_prefetch=0, grid=(1,),
            in_specs=[pl.BlockSpec((Bp * S, Cp), lambda i: (0, 0)),
                      pl.BlockSpec((1, Cp), lambda i: (0, 0)),
                      pl.BlockSpec((1, Cp), lambda i: (0, 0)),
                      pl.BlockSpec((Bp, Kh), lambda i: (0, 0)),
                      pl.BlockSpec((Cp, Np), lambda i: (0, 0)),
                      pl.BlockSpec((Kh, Np), lambda i: (0, 0)),
                      pl.BlockSpec((1, Np), lambda i: (0, 0))],
            out_specs=pl.BlockSpec((Bp, Np), lambda i: (0, 0))),
        compiler_params=pltpu.CompilerParams(
            dimension_semantics=("arbitrary",),
            vmem_limit_bytes=VMEM_LIMIT),
    ))


def head_pallas(feat_nhwc, hog, norm5, wf, wh, b):
    """norm5 + ReLU + adaptive_avg_pool2d((1,1)) + cat(hog) + Linear, fused."""
    B, H, W, C = feat_nhwc.shape
    S = H * W
    Bp = max(_round_up(B, 8), 8)
    Cp = _round_up(C, 128)
    Kh = _round_up(hog.shape[1], 128)
    Np = _round_up(NUM_CLASSES, 128)
    feat = feat_nhwc.reshape(B * S, C)
    feat_p = jnp.pad(feat, ((0, Bp * S - B * S), (0, Cp - C)))
    s5 = jnp.pad(norm5[0].reshape(1, C), ((0, 0), (0, Cp - C)))
    t5 = jnp.pad(norm5[1].reshape(1, C), ((0, 0), (0, Cp - C)))
    hog_p = jnp.pad(hog.astype(jnp.float32), ((0, Bp - B), (0, Kh - hog.shape[1])))
    wf_p = jnp.pad(wf, ((0, Cp - C), (0, Np - NUM_CLASSES)))
    wh_p = jnp.pad(wh, ((0, Kh - hog.shape[1]), (0, Np - NUM_CLASSES)))
    b_p = jnp.pad(b.reshape(1, -1), ((0, 0), (0, Np - NUM_CLASSES)))
    fn = _head_call(Bp, S, Cp, Kh, Np)
    return fn(feat_p, s5, t5, hog_p, wf_p, wh_p, b_p)[:B, :NUM_CLASSES]


# ------------------------------- JAX glue ------------------------------------
def maxpool_3x3_s2_p1(x):   # NHWC
    return lax.reduce_window(x, jnp.array(-jnp.inf, x.dtype), lax.max,
                             window_dimensions=(1, 3, 3, 1),
                             window_strides=(1, 2, 2, 1),
                             padding=((0, 0), (1, 1), (1, 1), (0, 0)))


def avgpool_2x2(x):         # NHWC, even H/W
    B, H, W, C = x.shape
    y = x.astype(jnp.float32).reshape(B, H // 2, 2, W // 2, 2, C).mean(axis=(2, 4))
    return y.astype(x.dtype)


# ------------------------- DenseNet-169 feature stack ------------------------
def densenet_features_pallas(params, x_nchw):
    x = jnp.transpose(x_nchw, (0, 2, 3, 1)).astype(jnp.bfloat16)   # NCHW -> NHWC
    # conv0 with norm0+ReLU fused as epilogue
    x = conv2d_fused(x, params["conv0"], 2, 3,
                     post=params["norm0"], post_relu=True)
    x = maxpool_3x3_s2_p1(x)
    for bi, nlayers in enumerate(BLOCK_CONFIG):
        for li in range(nlayers):
            lp = params["blocks"][bi][li]
            # norm1+ReLU as prologue and norm2+ReLU as epilogue of the 1x1 conv;
            # the 3x3 conv then runs plain (its input is already BN'd + ReLU'd).
            h = conv2d_fused(x, lp["conv1"], 1, 0,
                             pre=lp["norm1"], pre_relu=True,
                             post=lp["norm2"], post_relu=True)
            h = conv2d_fused(h, lp["conv2"], 1, 1)
            x = jnp.concatenate([x, h], axis=-1)
        if bi != len(BLOCK_CONFIG) - 1:
            tp = params["transitions"][bi]
            h = conv2d_fused(x, tp["conv"], 1, 0,
                             pre=tp["norm"], pre_relu=True)
            x = avgpool_2x2(h)
    return x   # NHWC bf16, C = 1664; norm5 is fused into the head kernel


def my_densenet_forward(params, x_nchw, hog):
    feat = densenet_features_pallas(params, x_nchw)
    return head_pallas(feat, hog, params["norm5"],
                       params["cls_wf"], params["cls_wh"], params["cls_b"])


# ----------------------------- pure-JAX reference ----------------------------
def _conv_ref(x, w, stride, padding):
    return lax.conv_general_dilated(
        x, w, window_strides=(stride, stride),
        padding=((padding, padding), (padding, padding)),
        dimension_numbers=('NHWC', 'OIHW', 'NHWC'),
        precision=lax.Precision.HIGHEST)


def _bn_ref(x, sb, relu=True):
    y = x * sb[0] + sb[1]
    return jnp.maximum(y, 0.0) if relu else y


def reference_forward(params, x_nchw, hog):
    x = jnp.transpose(x_nchw, (0, 2, 3, 1)).astype(jnp.float32)
    x = _conv_ref(x, params["conv0"], 2, 3)
    x = _bn_ref(x, params["norm0"], True)
    x = lax.reduce_window(x, jnp.array(-jnp.inf, x.dtype), lax.max,
                          (1, 3, 3, 1), (1, 2, 2, 1),
                          ((0, 0), (1, 1), (1, 1), (0, 0)))
    for bi, nlayers in enumerate(BLOCK_CONFIG):
        for li in range(nlayers):
            lp = params["blocks"][bi][li]
            h = _bn_ref(x, lp["norm1"], True)
            h = _conv_ref(h, lp["conv1"], 1, 0)
            h = _bn_ref(h, lp["norm2"], True)
            h = _conv_ref(h, lp["conv2"], 1, 1)
            x = jnp.concatenate([x, h], axis=-1)
        if bi != len(BLOCK_CONFIG) - 1:
            tp = params["transitions"][bi]
            h = _bn_ref(x, tp["norm"], True)
            h = _conv_ref(h, tp["conv"], 1, 0)
            B, H, W, C = h.shape
            x = h.reshape(B, H // 2, 2, W // 2, 2, C).mean(axis=(2, 4))
    x = _bn_ref(x, params["norm5"], False)
    pooled = jnp.maximum(x, 0.0).mean(axis=(1, 2))
    comb = jnp.concatenate([pooled, hog], axis=1)
    Wfull = jnp.concatenate([params["cls_wf"], params["cls_wh"]], axis=0)
    return jnp.dot(comb, Wfull, precision=lax.Precision.HIGHEST) + params["cls_b"]


# ----------------------------- deterministic init ----------------------------
def init_params():
    rng = np.random.default_rng(0)

    def conv_w(cout, cin, kh, kw):
        fan_in = cin * kh * kw
        return jnp.asarray(rng.normal(0.0, np.sqrt(2.0 / fan_in),
                                      (cout, cin, kh, kw)), dtype=jnp.float32)

    def bn_sb(c):   # folded inference batchnorm: y = x*scale + bias
        gamma = 1.0 + 0.1 * rng.standard_normal(c)
        beta = 0.05 * rng.standard_normal(c)
        mean = 0.05 * rng.standard_normal(c)
        var = 1.0 + 0.1 * rng.random(c)
        scale = gamma / np.sqrt(var + 1e-5)
        bias = beta - mean * scale
        return (jnp.asarray(scale, jnp.float32), jnp.asarray(bias, jnp.float32))

    params = {"conv0": conv_w(NUM_INIT, 3, 7, 7), "norm0": bn_sb(NUM_INIT)}
    blocks, transitions = [], []
    c = NUM_INIT
    for bi, nlayers in enumerate(BLOCK_CONFIG):
        layers = []
        for li in range(nlayers):
            cin = c + li * GROWTH
            layers.append({
                "norm1": bn_sb(cin),
                "conv1": conv_w(BN_SIZE * GROWTH, cin, 1, 1),
                "norm2": bn_sb(BN_SIZE * GROWTH),
                "conv2": conv_w(GROWTH, BN_SIZE * GROWTH, 3, 3),
            })
        blocks.append(layers)
        c += nlayers * GROWTH
        if bi != len(BLOCK_CONFIG) - 1:
            transitions.append({"norm": bn_sb(c), "conv": conv_w(c // 2, c, 1, 1)})
            c //= 2
    params["blocks"] = blocks
    params["transitions"] = transitions
    params["norm5"] = bn_sb(c)
    num_ftrs = c                                          # 1664 for DenseNet-169
    w = rng.normal(0.0, 1.0 / np.sqrt(num_ftrs + NUM_HOG),
                   (num_ftrs + NUM_HOG, NUM_CLASSES))
    b = rng.normal(0.0, 0.01, (NUM_CLASSES,))
    params["cls_wf"] = jnp.asarray(w[:num_ftrs], jnp.float32)
    params["cls_wh"] = jnp.asarray(w[num_ftrs:], jnp.float32)
    params["cls_b"] = jnp.asarray(b, jnp.float32)
    return params


# ----------------------------------- main ------------------------------------
if __name__ == "__main__":
    params = init_params()

    key = jax.random.PRNGKey(0)
    kx, kh = jax.random.split(key)
    x = jax.random.normal(kx, (2, 3, 32, 32), jnp.float32)       # NCHW like PyTorch
    hog = jax.random.normal(kh, (2, NUM_HOG), jnp.float32)

    out = jax.block_until_ready(my_densenet_forward(params, x, hog))
    assert out.shape == (2, NUM_CLASSES), out.shape
    assert bool(jnp.all(jnp.isfinite(out)))

    ref = jax.block_until_ready(reference_forward(params, x, hog))
    rel_err = float(jnp.max(jnp.abs(out - ref)) / (jnp.max(jnp.abs(ref)) + 1e-6))
    # bf16 MXU operands / bf16 inter-layer activations (f32 accumulation) across
    # an ~85-conv-deep path -> compare against the f32 reference at a
    # bf16-appropriate tolerance.
    assert rel_err < 5e-2, f"Pallas vs reference mismatch: rel_err={rel_err}"

    print("KERNEL_OK")
</pallas_src>

<mosaic_0001>
module attributes {stable_mosaic.version = 11 : i64} {
  func.func @_conv_mm_kernel(%arg0: i32, %arg1: i32, %arg2: i32, %arg3: memref<512x256xbf16, #tpu.memory_space<vmem>>, %arg4: memref<256x128xbf16, #tpu.memory_space<vmem>>, %arg5: memref<1x256xf32, #tpu.memory_space<vmem>>, %arg6: memref<1x256xf32, #tpu.memory_space<vmem>>, %arg7: memref<1x128xf32, #tpu.memory_space<vmem>>, %arg8: memref<1x128xf32, #tpu.memory_space<vmem>>, %arg9: memref<512x128xbf16, #tpu.memory_space<vmem>>, %arg10: memref<512x128xf32, #tpu.memory_space<vmem>>) attributes {dimension_semantics = [#tpu.dimension_semantics<parallel>, #tpu.dimension_semantics<parallel>, #tpu.dimension_semantics<arbitrary>], iteration_bounds = array<i64: 1, 1, 1>, scalar_prefetch = 0 : i64, scratch_operands = 1 : i64, tpu.core_type = #tpu.core_type<tc>, window_params = [{transform_indices = @transform_0, window_bounds = array<i64: 512, 256>}, {transform_indices = @transform_1, window_bounds = array<i64: 256, 128>}, {transform_indices = @transform_2, window_bounds = array<i64: 1, 256>}, {transform_indices = @transform_3, window_bounds = array<i64: 1, 256>}, {transform_indices = @transform_4, window_bounds = array<i64: 1, 128>}, {transform_indices = @transform_5, window_bounds = array<i64: 1, 128>}, {transform_indices = @transform_6, window_bounds = array<i64: 512, 128>}]} {
    %c0_i32 = arith.constant 0 : i32
    %0 = arith.cmpi eq, %arg2, %c0_i32 : i32
    %1 = arith.extui %0 : i1 to i32
    %c0_i32_0 = arith.constant 0 : i32
    %2 = arith.cmpi ne, %1, %c0_i32_0 : i32
    scf.if %2 {
      %cst_10 = arith.constant 0.000000e+00 : f32
      %12 = vector.broadcast %cst_10 : f32 to vector<512x128xf32>
      %c0_11 = arith.constant 0 : index
      %c0_12 = arith.constant 0 : index
      %13 = vector.load %arg10[%c0_11, %c0_12] : memref<512x128xf32, #tpu.memory_space<vmem>>, vector<512x128xf32>
      tpu.vector_store %arg10[%c0_11, %c0_12], %12 {strides = array<i32>} : memref<512x128xf32, #tpu.memory_space<vmem>>, vector<512x128xf32>,
    } else {
    }
    %c0 = arith.constant 0 : index
    %c0_1 = arith.constant 0 : index
    %3 = vector.load %arg3[%c0, %c0_1] : memref<512x256xbf16, #tpu.memory_space<vmem>>, vector<512x256xbf16>
    %c0_2 = arith.constant 0 : index
    %c0_3 = arith.constant 0 : index
    %4 = vector.load %arg10[%c0_2, %c0_3] : memref<512x128xf32, #tpu.memory_space<vmem>>, vector<512x128xf32>
    %c0_4 = arith.constant 0 : index
    %c0_5 = arith.constant 0 : index
    %5 = vector.load %arg4[%c0_4, %c0_5] : memref<256x128xbf16, #tpu.memory_space<vmem>>, vector<256x128xbf16>
    %cst = arith.constant dense<0.000000e+00> : vector<512x128xf32>
    %6 = tpu.matmul %3, %5, %cst {dimension_numbers = #tpu.dot_dimension_numbers<[1], [0], [0], [1], [0, 0, 1, 1], [], []>} : vector<512x256xbf16>, vector<256x128xbf16>, vector<512x128xf32> -> vector<512x128xf32>
    %7 = arith.addf %4, %6 : vector<512x128xf32>
    %c0_6 = arith.constant 0 : index
    %c0_7 = arith.constant 0 : index
    %8 = vector.load %arg10[%c0_6, %c0_7] : memref<512x128xf32, #tpu.memory_space<vmem>>, vector<512x128xf32>
    tpu.vector_store %arg10[%c0_6, %c0_7], %7 {strides = array<i32>} : memref<512x128xf32, #tpu.memory_space<vmem>>, vector<512x128xf32>,
    %c0_i32_8 = arith.constant 0 : i32
    %9 = arith.cmpi eq, %arg2, %c0_i32_8 : i32
    %10 = arith.extui %9 : i1 to i32
    %c0_i32_9 = arith.constant 0 : i32
    %11 = arith.cmpi ne, %10, %c0_i32_9 : i32
    scf.if %11 {
      %c0_10 = arith.constant 0 : index
      %c0_11 = arith.constant 0 : index
      %12 = vector.load %arg10[%c0_10, %c0_11] : memref<512x128xf32, #tpu.memory_space<vmem>>, vector<512x128xf32>
      %c0_12 = arith.constant 0 : index
      %c0_13 = arith.constant 0 : index
      %13 = vector.load %arg7[%c0_12, %c0_13] : memref<1x128xf32, #tpu.memory_space<vmem>>, vector<1x128xf32>
      %14 = vector.broadcast %13 : vector<1x128xf32> to vector<512x128xf32>
      %15 = arith.mulf %12, %14 : vector<512x128xf32>
      %c0_14 = arith.constant 0 : index
      %c0_15 = arith.constant 0 : index
      %16 = vector.load %arg8[%c0_14, %c0_15] : memref<1x128xf32, #tpu.memory_space<vmem>>, vector<1x128xf32>
      %17 = vector.broadcast %16 : vector<1x128xf32> to vector<512x128xf32>
      %18 = arith.addf %15, %17 : vector<512x128xf32>
      %cst_16 = arith.constant 0.000000e+00 : f32
      %19 = vector.broadcast %cst_16 : f32 to vector<512x128xf32>
      %20 = arith.maximumf %18, %19 : vector<512x128xf32>
      %21 = arith.truncf %20 : vector<512x128xf32> to vector<512x128xbf16>
      %c0_17 = arith.constant 0 : index
      %c0_18 = arith.constant 0 : index
      %22 = vector.load %arg9[%c0_17, %c0_18] : memref<512x128xbf16, #tpu.memory_space<vmem>>, vector<512x128xbf16>
      tpu.vector_store %arg9[%c0_17, %c0_18], %21 {strides = array<i32>} : memref<512x128xbf16, #tpu.memory_space<vmem>>, vector<512x128xbf16>,
    } else {
    }
    return
  }
  func.func @transform_0(%arg0: i32, %arg1: i32, %arg2: i32) -> (i32, i32) {
    %c0_i32 = arith.constant 0 : i32
    return %arg0, %arg2 : i32, i32
  }
  func.func @transform_1(%arg0: i32, %arg1: i32, %arg2: i32) -> (i32, i32) {
    %c0_i32 = arith.constant 0 : i32
    return %arg2, %arg1 : i32, i32
  }
  func.func @transform_2(%arg0: i32, %arg1: i32, %arg2: i32) -> (i32, i32) {
    %c0_i32 = arith.constant 0 : i32
    %c0_i32_0 = arith.constant 0 : i32
    return %c0_i32, %arg2 : i32, i32
  }
  func.func @transform_3(%arg0: i32, %arg1: i32, %arg2: i32) -> (i32, i32) {
    %c0_i32 = arith.constant 0 : i32
    %c0_i32_0 = arith.constant 0 : i32
    return %c0_i32, %arg2 : i32, i32
  }
  func.func @transform_4(%arg0: i32, %arg1: i32, %arg2: i32) -> (i32, i32) {
    %c0_i32 = arith.constant 0 : i32
    %c0_i32_0 = arith.constant 0 : i32
    return %c0_i32, %arg1 : i32, i32
  }
  func.func @transform_5(%arg0: i32, %arg1: i32, %arg2: i32) -> (i32, i32) {
    %c0_i32 = arith.constant 0 : i32
    %c0_i32_0 = arith.constant 0 : i32
    return %c0_i32, %arg1 : i32, i32
  }
  func.func @transform_6(%arg0: i32, %arg1: i32, %arg2: i32) -> (i32, i32) {
    %c0_i32 = arith.constant 0 : i32
    return %arg0, %arg1 : i32, i32
  }
}

</mosaic_0001>

<bundles_post_ra>
// kernel: tpu_custom_call.1
= control target key start
LH: loop header
LB: loop body
LE: loop exit
PB: predicated region body
PF: predicated region fallthrough
CT: control target
= control target key end

     0   :  { %11 = vsyncpa [#allocation4], 0  ;;  %s2605_s0 = inlined_call_operand.hbm [shape: bf16[512,256], index: 0, kind: input, shape index: {}]   ;;  %s2606_s1 = inlined_call_operand.hbm [shape: bf16[256,128], index: 1, kind: input, shape index: {}]   ;;  %s2607_s2 = inlined_call_operand.vmem [shape: f32[1,256], index: 2, kind: input, shape index: {}]   ;;  %s2608_s3 = inlined_call_operand.vmem [shape: f32[1,256], index: 3, kind: input, shape index: {}]   ;;  %s2609_s4 = inlined_call_operand.vmem [shape: f32[1,128], index: 4, kind: input, shape index: {}]   ;;  %s2610_s5 = inlined_call_operand.vmem [shape: f32[1,128], index: 5, kind: input, shape index: {}]   ;;  %s2611_s6 = inlined_call_operand.hbm [shape: bf16[512,128], index: 6, kind: output, shape index: {}]  }
   0x1   :  { %12 = vsyncpa [#allocation7], 0 }
   0x2   :  { %13 = vsyncpa [#allocation5], 0  ;;  %s2350_s21 = smov [#allocation3]   ;;  %s2278_s24 = scalar_lea.hbm %s2605_s0, 8192 }
   0x3   :  { %s19_s22 = sshll.u32 %s2350_s21, 4  ;;  %p2279_p0 = scmp.ne.s32.totalorder %s2605_s0, %s2278_s24  ;;  %s20_s22 = int_to_ptr.vmem [resolvable:$true] %s19_s22 }
   0x4   :  { %p2282_p1 = scmp.lt.u32.totalorder %s2278_s24, %s2605_s0 }
   0x6   :  { %p2284_p2 = pnand %p2282_p1, %p2279_p0 }
   0x8   :  { %2287 = shalt.err (!%p2284_p2)
}
   0x9   :  { %s2288_s28 = scalar_lea.vmem %s20_s22, 8192  ;;  %p2293_p4 = scmp.lt.s32.totalorder %s20_s22, %s20_s22 }
   0xa   :  { %p2289_p3 = scmp.ne.s32.totalorder %s20_s22, %s2288_s28  ;;  %p2294_p5 = scmp.lt.s32.totalorder %s2288_s28, %s2288_s28 }
   0xc   :  { %p2295_p6 = por %p2294_p5, %p2293_p4 }
   0xe   :  { %p2296_p7 = pnand %p2295_p6, %p2289_p3 }
  0x10   :  { %2299 = shalt.err (!%p2296_p7)
}
  0x11   :  { %s2351_s29 = smov 128   ;;  %s2352_s30 = smov 8  }
  0x12   :  { %25 = dma.hbm_to_vmem [thread:$0]  %s2605_s0, 8192, %s20_s22, [#allocation4], %s2351_s29, %s2351_s29, %s2352_s30  }
  0x13   :  { %s2353_s9 = smov [#allocation6]   ;;  %s2300_s13 = scalar_lea.hbm %s2606_s1, 2048 }
  0x14   :  { %s31_s10 = sshll.u32 %s2353_s9, 4  ;;  %p2301_p8 = scmp.ne.s32.totalorder %s2606_s1, %s2300_s13  ;;  %s32_s10 = int_to_ptr.vmem [resolvable:$true] %s31_s10 }
  0x15   :  { %p2304_p9 = scmp.lt.u32.totalorder %s2300_s13, %s2606_s1 }
  0x17   :  { %p2306_p10 = pnand %p2304_p9, %p2301_p8 }
  0x19   :  { %2309 = shalt.err (!%p2306_p10)
}
  0x1a   :  { %s2310_s18 = scalar_lea.vmem %s32_s10, 2048  ;;  %p2315_p12 = scmp.lt.s32.totalorder %s32_s10, %s32_s10 }
  0x1b   :  { %p2311_p11 = scmp.ne.s32.totalorder %s32_s10, %s2310_s18  ;;  %p2316_p13 = scmp.lt.s32.totalorder %s2310_s18, %s2310_s18 }
  0x1d   :  { %p2317_p0 = por %p2316_p13, %p2315_p12 }
  0x1f   :  { %p2318_p1 = pnand %p2317_p0, %p2311_p11 }
  0x21   :  { %2321 = shalt.err (!%p2318_p1)
}
  0x22   :  { %s2354_s0 = smov 64   ;;  %s2355_s19 = smov 4  }
  0x23   :  { %37 = dma.hbm_to_vmem [thread:$0]  %s2606_s1, 2048, %s32_s10, [#allocation7], %s2354_s0, %s2354_s0, %s2355_s19  }
  0x24   :  { %2344 = dma.done.wait [#allocation4], 8192  }
  0x25   :  { %2345 = vsyncadd [#allocation4], 4294959104 }
  0x26   :  { %2346 = dma.done.wait [#allocation7], 2048  }
  0x27   :  { %2347 = vsyncadd [#allocation7], 4294965248  ;;  %v2356_v0 = vmov 0   ;;  %v2166_v1 = vld [vmem:[#allocation6] sm:$0xff]   ;;  %v2167_v2 = vld [vmem:[#allocation6 + $0x8] sm:$0xff]  }
  0x28   :  { %697 = vmatprep.subr.bf16.mxu0 %v2356_v0  ;;  %2126 = vmatprep.subr.bf16.mxu1 %v2356_v0  ;;  %v2168_v3 = vld [vmem:[#allocation6 + $0x10] sm:$0xff]   ;;  %v2169_v4 = vld [vmem:[#allocation6 + $0x18] sm:$0xff]   ;;  %v2170_v5 = vld [vmem:[#allocation6 + $0x20] sm:$0xff]  }
  0x29   :  { %698 = vmatpush1.bf16.msra.mxu0 %v2166_v1  ;;  %2142 = vmatpush1.bf16.msra.mxu1 %v2166_v1  ;;  %v2184_v6 = vld [vmem:[#allocation3 + $0x4] ss:$8 sps:$4 sm:$0xff]   ;;  %v2172_v9 = vld [vmem:[#allocation6 + $0x30] sm:$0xff]   ;;  %v2173_v10 = vld [vmem:[#allocation6 + $0x38] sm:$0xff]  }
  0x2a   :  { %699 = vmatprep.subr.bf16.mxu0 %v2356_v0  ;;  %2127 = vmatprep.subr.bf16.mxu1 %v2356_v0  ;;  %v2171_v7 = vld [vmem:[#allocation6 + $0x28] sm:$0xff]   ;;  %v2174_v11 = vld [vmem:[#allocation6 + $0x40] sm:$0xff]   ;;  %v2176_v13 = vld [vmem:[#allocation6 + $0x50] sm:$0xff]  }
  0x2b   :  { %v2187_v8 = vld [vmem:[#allocation3 + $0x104] ss:$8 sps:$4 sm:$0xff]   ;;  %729 = vmatprep.mubr.bf16.mxu0 %v2184_v6  ;;  %v2177_v14 = vld [vmem:[#allocation6 + $0x58] sm:$0xff]   ;;  %v2180_v17 = vld [vmem:[#allocation6 + $0x70] sm:$0xff]  }
  0x2c   :  { %857 = vmatprep.mubr.bf16.mxu1 %v2187_v8  ;;  %v2175_v12 = vld [vmem:[#allocation6 + $0x48] sm:$0xff]   ;;  %v2178_v15 = vld [vmem:[#allocation6 + $0x60] sm:$0xff]   ;;  %v2181_v18 = vld [vmem:[#allocation6 + $0x78] sm:$0xff]  }
  0x2d   :  { %700 = vmatpush1.bf16.msra.mxu0 %v2167_v2  ;;  %2143 = vmatpush1.bf16.msra.mxu1 %v2167_v2  ;;  %v2179_v16 = vld [vmem:[#allocation6 + $0x68] sm:$0xff]   ;;  %v2188_v21 = vld [vmem:[#allocation3 + $0x14] ss:$8 sps:$4 sm:$0xff]   ;;  %v2192_v23 = vld [vmem:[#allocation3 + $0x10] ss:$8 sps:$4 sm:$0xff]  }
  0x2e   :  { %701 = vmatprep.subr.bf16.mxu0 %v2356_v0  ;;  %2128 = vmatprep.subr.bf16.mxu1 %v2356_v0  ;;  %v2182_v19 = vld [vmem:[#allocation3] ss:$8 sps:$4 sm:$0xff]   ;;  %v2190_v22 = vld [vmem:[#allocation3 + $0x114] ss:$8 sps:$4 sm:$0xff]   ;;  %v2193_v24 = vld [vmem:[#allocation3 + $0x110] ss:$8 sps:$4 sm:$0xff]  }
  0x2f   :  { %v2185_v20 = vld [vmem:[#allocation3 + $0x100] ss:$8 sps:$4 sm:$0xff]   ;;  %v2194_v25 = vld [vmem:[#allocation3 + $0x24] ss:$8 sps:$4 sm:$0xff]   ;;  %v2200_v29 = vld [vmem:[#allocation3 + $0x34] ss:$8 sps:$4 sm:$0xff]  }
  0x30   :  { %v2196_v26 = vld [vmem:[#allocation3 + $0x124] ss:$8 sps:$4 sm:$0xff]   ;;  %v2198_v27 = vld [vmem:[#allocation3 + $0x20] ss:$8 sps:$4 sm:$0xff]   ;;  %v2202_v30 = vld [vmem:[#allocation3 + $0x134] ss:$8 sps:$4 sm:$0xff]  }
  0x31   :  { %702 = vmatpush1.bf16.msra.mxu0 %v2168_v3  ;;  %2144 = vmatpush1.bf16.msra.mxu1 %v2168_v3  ;;  %v2199_v28 = vld [vmem:[#allocation3 + $0x120] ss:$8 sps:$4 sm:$0xff]   ;;  %v2204_v31 = vld [vmem:[#allocation3 + $0x30] ss:$8 sps:$4 sm:$0xff]   ;;  %v2206_v33 = vld [vmem:[#allocation3 + $0x44] ss:$8 sps:$4 sm:$0xff]  }
  0x32   :  { %703 = vmatprep.subr.bf16.mxu0 %v2356_v0  ;;  %2129 = vmatprep.subr.bf16.mxu1 %v2356_v0  ;;  %v2205_v32 = vld [vmem:[#allocation3 + $0x130] ss:$8 sps:$4 sm:$0xff]   ;;  %v2208_v34 = vld [vmem:[#allocation3 + $0x144] ss:$8 sps:$4 sm:$0xff]   ;;  %v2210_v35 = vld [vmem:[#allocation3 + $0x40] ss:$8 sps:$4 sm:$0xff]  }
  0x33   :  { %v2211_v36 = vld [vmem:[#allocation3 + $0x140] ss:$8 sps:$4 sm:$0xff]   ;;  %v2212_v37 = vld [vmem:[#allocation3 + $0x54] ss:$8 sps:$4 sm:$0xff]   ;;  %v2216_v39 = vld [vmem:[#allocation3 + $0x50] ss:$8 sps:$4 sm:$0xff]  }
  0x34   :  { %v2214_v38 = vld [vmem:[#allocation3 + $0x154] ss:$8 sps:$4 sm:$0xff]   ;;  %v2217_v40 = vld [vmem:[#allocation3 + $0x150] ss:$8 sps:$4 sm:$0xff]   ;;  %v2218_v41 = vld [vmem:[#allocation3 + $0x64] ss:$8 sps:$4 sm:$0xff]  }
  0x35   :  { %704 = vmatpush1.bf16.msra.mxu0 %v2169_v4  ;;  %2145 = vmatpush1.bf16.msra.mxu1 %v2169_v4  ;;  %v2220_v42 = vld [vmem:[#allocation3 + $0x164] ss:$8 sps:$4 sm:$0xff]   ;;  %v2222_v43 = vld [vmem:[#allocation3 + $0x60] ss:$8 sps:$4 sm:$0xff]   ;;  %v2224_v45 = vld [vmem:[#allocation3 + $0x74] ss:$8 sps:$4 sm:$0xff]  }
  0x36   :  { %705 = vmatprep.subr.bf16.mxu0 %v2356_v0  ;;  %2130 = vmatprep.subr.bf16.mxu1 %v2356_v0  ;;  %v2223_v44 = vld [vmem:[#allocation3 + $0x160] ss:$8 sps:$4 sm:$0xff]   ;;  %v2226_v46 = vld [vmem:[#allocation3 + $0x174] ss:$8 sps:$4 sm:$0xff]   ;;  %v2228_v47 = vld [vmem:[#allocation3 + $0x70] ss:$8 sps:$4 sm:$0xff]  }
  0x37   :  { %v2229_v48 = vld [vmem:[#allocation3 + $0x170] ss:$8 sps:$4 sm:$0xff]   ;;  %v2230_v49 = vld [vmem:[#allocation3 + $0x84] ss:$8 sps:$4 sm:$0xff]   ;;  %v2234_v51 = vld [vmem:[#allocation3 + $0x80] ss:$8 sps:$4 sm:$0xff]  }
  0x38   :  { %v2232_v50 = vld [vmem:[#allocation3 + $0x184] ss:$8 sps:$4 sm:$0xff]   ;;  %v2235_v52 = vld [vmem:[#allocation3 + $0x180] ss:$8 sps:$4 sm:$0xff]   ;;  %v2236_v53 = vld [vmem:[#allocation3 + $0x94] ss:$8 sps:$4 sm:$0xff]  }
  0x39   :  { %706 = vmatpush1.bf16.msra.mxu0 %v2170_v5  ;;  %2146 = vmatpush1.bf16.msra.mxu1 %v2170_v5  ;;  %v2238_v54 = vld [vmem:[#allocation3 + $0x194] ss:$8 sps:$4 sm:$0xff]   ;;  %v2240_v55 = vld [vmem:[#allocation3 + $0x90] ss:$8 sps:$4 sm:$0xff]   ;;  %v2242_v57 = vld [vmem:[#allocation3 + $0xa4] ss:$8 sps:$4 sm:$0xff]  }
  0x3a   :  { %707 = vmatprep.subr.bf16.mxu0 %v2356_v0  ;;  %2131 = vmatprep.subr.bf16.mxu1 %v2356_v0  ;;  %v2241_v56 = vld [vmem:[#allocation3 + $0x190] ss:$8 sps:$4 sm:$0xff]   ;;  %v2244_v58 = vld [vmem:[#allocation3 + $0x1a4] ss:$8 sps:$4 sm:$0xff]   ;;  %v2246_v59 = vld [vmem:[#allocation3 + $0xa0] ss:$8 sps:$4 sm:$0xff]  }
  0x3b   :  { %v2247_v60 = vld [vmem:[#allocation3 + $0x1a0] ss:$8 sps:$4 sm:$0xff]   ;;  %v2248_v61 = vld [vmem:[#allocation3 + $0xb4] ss:$8 sps:$4 sm:$0xff]   ;;  %v2252_v63 = vld [vmem:[#allocation3 + $0xb0] ss:$8 sps:$4 sm:$0xff]  }
  0x3c   :  { %v2250_v62 = vld [vmem:[#allocation3 + $0x1b4] ss:$8 sps:$4 sm:$0xff]   ;;  %v2254_v1 = vld [vmem:[#allocation3 + $0xc4] ss:$8 sps:$4 sm:$0xff]   ;;  %v2258_v3 = vld [vmem:[#allocation3 + $0xc0] ss:$8 sps:$4 sm:$0xff]  }
  0x3d   :  { %708 = vmatpush1.bf16.msra.mxu0 %v2171_v7  ;;  %2147 = vmatpush1.bf16.msra.mxu1 %v2171_v7  ;;  %v2256_v2 = vld [vmem:[#allocation3 + $0x1c4] ss:$8 sps:$4 sm:$0xff]   ;;  %v2259_v4 = vld [vmem:[#allocation3 + $0x1c0] ss:$8 sps:$4 sm:$0xff]   ;;  %v2260_v5 = vld [vmem:[#allocation3 + $0xd4] ss:$8 sps:$4 sm:$0xff]  }
  0x3e   :  { %709 = vmatprep.subr.bf16.mxu0 %v2356_v0  ;;  %2132 = vmatprep.subr.bf16.mxu1 %v2356_v0  ;;  %v2262_v6 = vld [vmem:[#allocation3 + $0x1d4] ss:$8 sps:$4 sm:$0xff]   ;;  %v2264_v7 = vld [vmem:[#allocation3 + $0xd0] ss:$8 sps:$4 sm:$0xff]  }
  0x3f   :  { %v2265_v8 = vld [vmem:[#allocation3 + $0x1d0] ss:$8 sps:$4 sm:$0xff]  }
  0x41   :  { %710 = vmatpush1.bf16.msra.mxu0 %v2172_v9  ;;  %2148 = vmatpush1.bf16.msra.mxu1 %v2172_v9  ;;  %v2266_v9 = vld [vmem:[#allocation3 + $0xe4] ss:$8 sps:$4 sm:$0xff]  }
  0x42   :  { %711 = vmatprep.subr.bf16.mxu0 %v2356_v0  ;;  %2133 = vmatprep.subr.bf16.mxu1 %v2356_v0 }
  0x45   :  { %712 = vmatpush1.bf16.msra.mxu0 %v2173_v10  ;;  %2149 = vmatpush1.bf16.msra.mxu1 %v2173_v10  ;;  %v2268_v10 = vld [vmem:[#allocation3 + $0x1e4] ss:$8 sps:$4 sm:$0xff]  }
  0x46   :  { %713 = vmatprep.subr.bf16.mxu0 %v2356_v0  ;;  %2134 = vmatprep.subr.bf16.mxu1 %v2356_v0 }
  0x49   :  { %714 = vmatpush1.bf16.msra.mxu0 %v2174_v11  ;;  %2150 = vmatpush1.bf16.msra.mxu1 %v2174_v11  ;;  %v2270_v11 = vld [vmem:[#allocation3 + $0xe0] ss:$8 sps:$4 sm:$0xff]  }
  0x4a   :  { %715 = vmatprep.subr.bf16.mxu0 %v2356_v0  ;;  %2135 = vmatprep.subr.bf16.mxu1 %v2356_v0 }
  0x4d   :  { %716 = vmatpush1.bf16.msra.mxu0 %v2175_v12  ;;  %2151 = vmatpush1.bf16.msra.mxu1 %v2175_v12  ;;  %v2271_v12 = vld [vmem:[#allocation3 + $0x1e0] ss:$8 sps:$4 sm:$0xff]  }
  0x4e   :  { %717 = vmatprep.subr.bf16.mxu0 %v2356_v0  ;;  %2136 = vmatprep.subr.bf16.mxu1 %v2356_v0 }
  0x51   :  { %718 = vmatpush1.bf16.msra.mxu0 %v2176_v13  ;;  %2152 = vmatpush1.bf16.msra.mxu1 %v2176_v13  ;;  %v2272_v13 = vld [vmem:[#allocation3 + $0xf4] ss:$8 sps:$4 sm:$0xff]  }
  0x52   :  { %719 = vmatprep.subr.bf16.mxu0 %v2356_v0  ;;  %2137 = vmatprep.subr.bf16.mxu1 %v2356_v0 }
  0x55   :  { %720 = vmatpush1.bf16.msra.mxu0 %v2177_v14  ;;  %2153 = vmatpush1.bf16.msra.mxu1 %v2177_v14  ;;  %v2274_v14 = vld [vmem:[#allocation3 + $0x1f4] ss:$8 sps:$4 sm:$0xff]  }
  0x56   :  { %721 = vmatprep.subr.bf16.mxu0 %v2356_v0  ;;  %2138 = vmatprep.subr.bf16.mxu1 %v2356_v0 }
  0x59   :  { %722 = vmatpush1.bf16.msra.mxu0 %v2178_v15  ;;  %2154 = vmatpush1.bf16.msra.mxu1 %v2178_v15  ;;  %v2276_v15 = vld [vmem:[#allocation3 + $0xf0] ss:$8 sps:$4 sm:$0xff]  }
  0x5a   :  { %723 = vmatprep.subr.bf16.mxu0 %v2356_v0  ;;  %2139 = vmatprep.subr.bf16.mxu1 %v2356_v0 }
  0x5d   :  { %724 = vmatpush1.bf16.msra.mxu0 %v2179_v16  ;;  %2155 = vmatpush1.bf16.msra.mxu1 %v2179_v16  ;;  %v2277_v16 = vld [vmem:[#allocation3 + $0x1f0] ss:$8 sps:$4 sm:$0xff]  }
  0x5e   :  { %725 = vmatprep.subr.bf16.mxu0 %v2356_v0  ;;  %2140 = vmatprep.subr.bf16.mxu1 %v2356_v0 }
  0x61   :  { %726 = vmatpush1.bf16.msra.mxu0 %v2180_v17  ;;  %2156 = vmatpush1.bf16.msra.mxu1 %v2180_v17  ;;  %v2455_v17 = vld [vmem:[%s2609_s4] ss:$0 sm:$0xff]  ;;  %s2357_s4 = smov [#allocation8]  }
  0x62   :  { %727 = vmatprep.subr.bf16.mxu0 %v2356_v0  ;;  %2141 = vmatprep.subr.bf16.mxu1 %v2356_v0  ;;  %v2253_v0 = vld [vmem:[#allocation3 + $0x1b0] ss:$8 sps:$4 sm:$0xff]  }
  0x65   :  { %728 = vmatpush1.bf16.msra.mxu0 %v2181_v18  ;;  %2157 = vmatpush1.bf16.msra.mxu1 %v2181_v18 }
  0x68   :  { %730 = vmatmul.mubr.bf16.vlgmr.msra.gmra.mrb[0].mxu0 %v2182_v19  ;;  %858 = vmatmul.mubr.bf16.vlgmr.msra.gmra.mrb[0].mxu1 %v2185_v20  ;;  %v2460_v19 = vld [vmem:[%s2610_s5] ss:$0 sm:$0xff]  ;;  %s1712_s5 = sshll.u32 %s2357_s4, 4  ;;  %s1713_s5 = int_to_ptr.vmem [resolvable:$true] %s1712_s5 }
  0x69   :  { %737 = vmatprep.mubr.bf16.mxu0 %v2188_v21  ;;  %865 = vmatprep.mubr.bf16.mxu1 %v2190_v22  ;;  %s2322_s24 = scalar_lea.vmem %s1713_s5, 4096  ;;  %p2327_p3 = scmp.lt.s32.totalorder %s1713_s5, %s1713_s5 }
  0x6a   :  { %p2323_p2 = scmp.ne.s32.totalorder %s1713_s5, %s2322_s24  ;;  %p2328_p4 = scmp.lt.s32.totalorder %s2322_s24, %s2322_s24 }
  0x6c   :  { %p2329_p5 = por %p2328_p4, %p2327_p3 }
  0x6e   :  { %p2330_p6 = pnand %p2329_p5, %p2323_p2 }
  0x70   :  { %738 = vmatmul.mubr.bf16.gmra.mrb[4].mxu0 %v2192_v23  ;;  %866 = vmatmul.mubr.bf16.gmra.mrb[4].mxu1 %v2193_v24 }
  0x71   :  { %745 = vmatprep.mubr.bf16.mxu0 %v2194_v25  ;;  %873 = vmatprep.mubr.bf16.mxu1 %v2196_v26 }
  0x78   :  { %746 = vmatmul.mubr.bf16.gmra.mrb[8].mxu0 %v2198_v27  ;;  %874 = vmatmul.mubr.bf16.gmra.mrb[8].mxu1 %v2199_v28 }
  0x79   :  { %753 = vmatprep.mubr.bf16.mxu0 %v2200_v29  ;;  %881 = vmatprep.mubr.bf16.mxu1 %v2202_v30 }
  0x80   :  { %754 = vmatmul.mubr.bf16.gmra.mrb[12].mxu0 %v2204_v31  ;;  %882 = vmatmul.mubr.bf16.gmra.mrb[12].mxu1 %v2205_v32 }
  0x81   :  { %761 = vmatprep.mubr.bf16.mxu0 %v2206_v33  ;;  %889 = vmatprep.mubr.bf16.mxu1 %v2208_v34 }
  0x88   :  { %762 = vmatmul.mubr.bf16.gmra.mrb[16].mxu0 %v2210_v35  ;;  %890 = vmatmul.mubr.bf16.gmra.mrb[16].mxu1 %v2211_v36 }
  0x89   :  { %769 = vmatprep.mubr.bf16.mxu0 %v2212_v37  ;;  %897 = vmatprep.mubr.bf16.mxu1 %v2214_v38 }
  0x90   :  { %770 = vmatmul.mubr.bf16.gmra.mrb[20].mxu0 %v2216_v39  ;;  %898 = vmatmul.mubr.bf16.gmra.mrb[20].mxu1 %v2217_v40 }
  0x91   :  { %777 = vmatprep.mubr.bf16.mxu0 %v2218_v41  ;;  %905 = vmatprep.mubr.bf16.mxu1 %v2220_v42 }
  0x98   :  { %778 = vmatmul.mubr.bf16.gmra.mrb[24].mxu0 %v2222_v43  ;;  %906 = vmatmul.mubr.bf16.gmra.mrb[24].mxu1 %v2223_v44 }
  0x99   :  { %785 = vmatprep.mubr.bf16.mxu0 %v2224_v45  ;;  %913 = vmatprep.mubr.bf16.mxu1 %v2226_v46 }
  0xa0   :  { %786 = vmatmul.mubr.bf16.gmra.mrb[28].mxu0 %v2228_v47  ;;  %914 = vmatmul.mubr.bf16.gmra.mrb[28].mxu1 %v2229_v48 }
  0xa1   :  { %793 = vmatprep.mubr.bf16.mxu0 %v2230_v49  ;;  %921 = vmatprep.mubr.bf16.mxu1 %v2232_v50 }
  0xa8   :  { %794 = vmatmul.mubr.bf16.gmra.mrb[32].mxu0 %v2234_v51  ;;  %922 = vmatmul.mubr.bf16.gmra.mrb[32].mxu1 %v2235_v52 }
  0xa9   :  { %801 = vmatprep.mubr.bf16.mxu0 %v2236_v53  ;;  %929 = vmatprep.mubr.bf16.mxu1 %v2238_v54 }
  0xb0   :  { %802 = vmatmul.mubr.bf16.gmra.mrb[36].mxu0 %v2240_v55  ;;  %930 = vmatmul.mubr.bf16.gmra.mrb[36].mxu1 %v2241_v56 }
  0xb1   :  { %809 = vmatprep.mubr.bf16.mxu0 %v2242_v57  ;;  %937 = vmatprep.mubr.bf16.mxu1 %v2244_v58 }
  0xb8   :  { %810 = vmatmul.mubr.bf16.gmra.mrb[40].mxu0 %v2246_v59  ;;  %938 = vmatmul.mubr.bf16.gmra.mrb[40].mxu1 %v2247_v60 }
  0xb9   :  { %817 = vmatprep.mubr.bf16.mxu0 %v2248_v61  ;;  %945 = vmatprep.mubr.bf16.mxu1 %v2250_v62 }
  0xc0   :  { %818 = vmatmul.mubr.bf16.gmra.mrb[44].mxu0 %v2252_v63  ;;  %946 = vmatmul.mubr.bf16.gmra.mrb[44].mxu1 %v2253_v0 }
  0xc1   :  { %825 = vmatprep.mubr.bf16.mxu0 %v2254_v1  ;;  %953 = vmatprep.mubr.bf16.mxu1 %v2256_v2 }
  0xc8   :  { %826 = vmatmul.mubr.bf16.gmra.mrb[48].mxu0 %v2258_v3  ;;  %954 = vmatmul.mubr.bf16.gmra.mrb[48].mxu1 %v2259_v4 }
  0xc9   :  { %833 = vmatprep.mubr.bf16.mxu0 %v2260_v5  ;;  %961 = vmatprep.mubr.bf16.mxu1 %v2262_v6 }
  0xd0   :  { %834 = vmatmul.mubr.bf16.gmra.mrb[52].mxu0 %v2264_v7  ;;  %962 = vmatmul.mubr.bf16.gmra.mrb[52].mxu1 %v2265_v8 }
  0xd1   :  { %841 = vmatprep.mubr.bf16.mxu0 %v2266_v9  ;;  %969 = vmatprep.mubr.bf16.mxu1 %v2268_v10 }
  0xd8   :  { %842 = vmatmul.mubr.bf16.gmra.mrb[56].mxu0 %v2270_v11  ;;  %970 = vmatmul.mubr.bf16.gmra.mrb[56].mxu1 %v2271_v12 }
  0xd9   :  { %849 = vmatprep.mubr.bf16.mxu0 %v2272_v13  ;;  %977 = vmatprep.mubr.bf16.mxu1 %v2274_v14 }
  0xe0   :  { %850 = vmatmul.mubr.bf16.gmra.mrb[60].mxu0 %v2276_v15  ;;  %978 = vmatmul.mubr.bf16.gmra.mrb[60].mxu1 %v2277_v16 }
 0x13b   :  { %v731_v18 = vpop.f32.mrb[0].mxu0  ;;  %v859_v20 = vpop.f32.mrb[0].mxu1 }
 0x13c   :  { %v1188_v21 = vmul.f32 %v2455_v17, %v731_v18  ;;  %v1220_v22 = vmul.f32 %v2455_v17, %v859_v20  ;;  %v733_v23 = vpop.f32.mrb[1].mxu0  ;;  %v861_v24 = vpop.f32.mrb[1].mxu1 }
 0x13d   :  { %v734_v25 = vpop.f32.mrb[2].mxu0  ;;  %v862_v26 = vpop.f32.mrb[2].mxu1 }
 0x13e   :  { %v1259_v27 = vadd.f32 %v2460_v19, %v1188_v21  ;;  %v1291_v28 = vadd.f32 %v2460_v19, %v1220_v22  ;;  %v1189_v29 = vmul.f32 %v2455_v17, %v734_v25  ;;  %v1221_v30 = vmul.f32 %v2455_v17, %v862_v26  ;;  %v736_v31 = vpop.f32.mrb[3].mxu0  ;;  %v864_v32 = vpop.f32.mrb[3].mxu1 }
 0x140   :  { %v1260_v33 = vadd.f32 %v2460_v19, %v1189_v29  ;;  %v1292_v34 = vadd.f32 %v2460_v19, %v1221_v30  ;;  %v1323_v35 = vmax.f32 %v1259_v27, 0.0  ;;  %v1355_v36 = vmax.f32 %v1291_v28, 0.0 }
 0x142   :  { %v1324_v37 = vmax.f32 %v1260_v33, 0.0  ;;  %v1356_v38 = vmax.f32 %v1292_v34, 0.0 }
 0x143   :  { %v739_v39 = vpop.f32.mrb[4].mxu0  ;;  %v867_v40 = vpop.f32.mrb[4].mxu1 }
 0x144   :  { %v1938_v41 = vpack.c.bf16 %v1324_v37, %v1323_v35  ;;  %v2018_v42 = vpack.c.bf16 %v1356_v38, %v1355_v36  ;;  %v1190_v43 = vmul.f32 %v2455_v17, %v739_v39  ;;  %v1222_v44 = vmul.f32 %v2455_v17, %v867_v40  ;;  %v741_v45 = vpop.f32.mrb[5].mxu0  ;;  %v869_v46 = vpop.f32.mrb[5].mxu1 }
 0x145   :  { %v742_v47 = vpop.f32.mrb[6].mxu0  ;;  %v870_v48 = vpop.f32.mrb[6].mxu1 }
 0x146   :  { %1939 = vst [vmem:[#allocation8] sm:$0xff] %v1938_v41   ;;  %2110 = vst [vmem:[#allocation8 + $0x80] sm:$0xff] %v2018_v42   ;;  %v1261_v49 = vadd.f32 %v2460_v19, %v1190_v43  ;;  %v1293_v50 = vadd.f32 %v2460_v19, %v1222_v44  ;;  %v1191_v51 = vmul.f32 %v2455_v17, %v742_v47  ;;  %v744_v53 = vpop.f32.mrb[7].mxu0  ;;  %v872_v54 = vpop.f32.mrb[7].mxu1 }
 0x147   :  { %v1223_v52 = vmul.f32 %v2455_v17, %v870_v48 }
 0x148   :  { %v1262_v55 = vadd.f32 %v2460_v19, %v1191_v51  ;;  %v1325_v57 = vmax.f32 %v1261_v49, 0.0  ;;  %v1357_v58 = vmax.f32 %v1293_v50, 0.0 }
 0x149   :  { %v1294_v56 = vadd.f32 %v2460_v19, %v1223_v52 }
 0x14a   :  { %v1326_v59 = vmax.f32 %v1262_v55, 0.0 }
 0x14b   :  { %v1358_v60 = vmax.f32 %v1294_v56, 0.0  ;;  %v747_v61 = vpop.f32.mrb[8].mxu0  ;;  %v875_v62 = vpop.f32.mrb[8].mxu1 }
 0x14c   :  { %v1943_v63 = vpack.c.bf16 %v1326_v59, %v1325_v57  ;;  %v1192_v1 = vmul.f32 %v2455_v17, %v747_v61  ;;  %v1224_v2 = vmul.f32 %v2455_v17, %v875_v62  ;;  %v749_v3 = vpop.f32.mrb[9].mxu0  ;;  %v877_v4 = vpop.f32.mrb[9].mxu1 }
 0x14d   :  { %v2023_v0 = vpack.c.bf16 %v1358_v60, %v1357_v58  ;;  %v750_v5 = vpop.f32.mrb[10].mxu0  ;;  %v878_v6 = vpop.f32.mrb[10].mxu1 }
 0x14e   :  { %2095 = vst [vmem:[#allocation8 + $0x8] sm:$0xff] %v1943_v63   ;;  %v1263_v7 = vadd.f32 %v2460_v19, %v1192_v1  ;;  %v1295_v8 = vadd.f32 %v2460_v19, %v1224_v2  ;;  %v1193_v9 = vmul.f32 %v2455_v17, %v750_v5  ;;  %v1225_v10 = vmul.f32 %v2455_v17, %v878_v6  ;;  %v752_v11 = vpop.f32.mrb[11].mxu0  ;;  %v880_v12 = vpop.f32.mrb[11].mxu1 }
 0x14f   :  { %2111 = vst [vmem:[#allocation8 + $0x88] sm:$0xff] %v2023_v0  }
 0x150   :  { %v1264_v13 = vadd.f32 %v2460_v19, %v1193_v9  ;;  %v1296_v14 = vadd.f32 %v2460_v19, %v1225_v10  ;;  %v1327_v15 = vmax.f32 %v1263_v7, 0.0  ;;  %v1359_v16 = vmax.f32 %v1295_v8, 0.0 }
 0x152   :  { %v1328_v18 = vmax.f32 %v1264_v13, 0.0  ;;  %v1360_v20 = vmax.f32 %v1296_v14, 0.0 }
 0x153   :  { %v755_v21 = vpop.f32.mrb[12].mxu0  ;;  %v883_v22 = vpop.f32.mrb[12].mxu1 }
 0x154   :  { %v1948_v23 = vpack.c.bf16 %v1328_v18, %v1327_v15  ;;  %v2028_v24 = vpack.c.bf16 %v1360_v20, %v1359_v16  ;;  %v1194_v25 = vmul.f32 %v2455_v17, %v755_v21  ;;  %v1226_v26 = vmul.f32 %v2455_v17, %v883_v22  ;;  %v757_v27 = vpop.f32.mrb[13].mxu0  ;;  %v885_v28 = vpop.f32.mrb[13].mxu1 }
 0x155   :  { %v758_v29 = vpop.f32.mrb[14].mxu0  ;;  %v886_v30 = vpop.f32.mrb[14].mxu1 }
 0x156   :  { %2096 = vst [vmem:[#allocation8 + $0x10] sm:$0xff] %v1948_v23   ;;  %2112 = vst [vmem:[#allocation8 + $0x90] sm:$0xff] %v2028_v24   ;;  %v1265_v31 = vadd.f32 %v2460_v19, %v1194_v25  ;;  %v1297_v32 = vadd.f32 %v2460_v19, %v1226_v26  ;;  %v1195_v33 = vmul.f32 %v2455_v17, %v758_v29  ;;  %v760_v35 = vpop.f32.mrb[15].mxu0  ;;  %v888_v36 = vpop.f32.mrb[15].mxu1 }
 0x157   :  { %v1227_v34 = vmul.f32 %v2455_v17, %v886_v30 }
 0x158   :  { %v1266_v37 = vadd.f32 %v2460_v19, %v1195_v33  ;;  %v1329_v39 = vmax.f32 %v1265_v31, 0.0  ;;  %v1361_v40 = vmax.f32 %v1297_v32, 0.0 }
 0x159   :  { %v1298_v38 = vadd.f32 %v2460_v19, %v1227_v34 }
 0x15a   :  { %v1330_v41 = vmax.f32 %v1266_v37, 0.0 }
 0x15b   :  { %v1362_v42 = vmax.f32 %v1298_v38, 0.0  ;;  %v763_v43 = vpop.f32.mrb[16].mxu0  ;;  %v891_v44 = vpop.f32.mrb[16].mxu1 }
 0x15c   :  { %v1953_v45 = vpack.c.bf16 %v1330_v41, %v1329_v39  ;;  %v1196_v47 = vmul.f32 %v2455_v17, %v763_v43  ;;  %v1228_v48 = vmul.f32 %v2455_v17, %v891_v44  ;;  %v765_v49 = vpop.f32.mrb[17].mxu0  ;;  %v893_v50 = vpop.f32.mrb[17].mxu1 }
 0x15d   :  { %v2033_v46 = vpack.c.bf16 %v1362_v42, %v1361_v40  ;;  %v766_v51 = vpop.f32.mrb[18].mxu0  ;;  %v894_v52 = vpop.f32.mrb[18].mxu1 }
 0x15e   :  { %2097 = vst [vmem:[#allocation8 + $0x18] sm:$0xff] %v1953_v45   ;;  %v1267_v53 = vadd.f32 %v2460_v19, %v1196_v47  ;;  %v1299_v54 = vadd.f32 %v2460_v19, %v1228_v48  ;;  %v1197_v55 = vmul.f32 %v2455_v17, %v766_v51  ;;  %v1229_v56 = vmul.f32 %v2455_v17, %v894_v52  ;;  %v768_v57 = vpop.f32.mrb[19].mxu0  ;;  %v896_v58 = vpop.f32.mrb[19].mxu1 }
 0x15f   :  { %2113 = vst [vmem:[#allocation8 + $0x98] sm:$0xff] %v2033_v46  }
 0x160   :  { %v1268_v59 = vadd.f32 %v2460_v19, %v1197_v55  ;;  %v1300_v60 = vadd.f32 %v2460_v19, %v1229_v56  ;;  %v1331_v61 = vmax.f32 %v1267_v53, 0.0  ;;  %v1363_v62 = vmax.f32 %v1299_v54, 0.0 }
 0x162   :  { %v1332_v63 = vmax.f32 %v1268_v59, 0.0  ;;  %v1364_v0 = vmax.f32 %v1300_v60, 0.0 }
 0x163   :  { %v771_v1 = vpop.f32.mrb[20].mxu0  ;;  %v899_v2 = vpop.f32.mrb[20].mxu1 }
 0x164   :  { %v1958_v3 = vpack.c.bf16 %v1332_v63, %v1331_v61  ;;  %v2038_v4 = vpack.c.bf16 %v1364_v0, %v1363_v62  ;;  %v1198_v5 = vmul.f32 %v2455_v17, %v771_v1  ;;  %v1230_v6 = vmul.f32 %v2455_v17, %v899_v2  ;;  %v773_v7 = vpop.f32.mrb[21].mxu0  ;;  %v901_v8 = vpop.f32.mrb[21].mxu1 }
 0x165   :  { %v774_v9 = vpop.f32.mrb[22].mxu0  ;;  %v902_v10 = vpop.f32.mrb[22].mxu1 }
 0x166   :  { %2098 = vst [vmem:[#allocation8 + $0x20] sm:$0xff] %v1958_v3   ;;  %2114 = vst [vmem:[#allocation8 + $0xa0] sm:$0xff] %v2038_v4   ;;  %v1269_v11 = vadd.f32 %v2460_v19, %v1198_v5  ;;  %v1301_v12 = vadd.f32 %v2460_v19, %v1230_v6  ;;  %v1199_v13 = vmul.f32 %v2455_v17, %v774_v9  ;;  %v776_v15 = vpop.f32.mrb[23].mxu0  ;;  %v904_v16 = vpop.f32.mrb[23].mxu1 }
 0x167   :  { %v1231_v14 = vmul.f32 %v2455_v17, %v902_v10 }
 0x168   :  { %v1270_v18 = vadd.f32 %v2460_v19, %v1199_v13  ;;  %v1333_v21 = vmax.f32 %v1269_v11, 0.0  ;;  %v1365_v22 = vmax.f32 %v1301_v12, 0.0 }
 0x169   :  { %v1302_v20 = vadd.f32 %v2460_v19, %v1231_v14 }
 0x16a   :  { %v1334_v23 = vmax.f32 %v1270_v18, 0.0 }
 0x16b   :  { %v1366_v24 = vmax.f32 %v1302_v20, 0.0  ;;  %v779_v25 = vpop.f32.mrb[24].mxu0  ;;  %v907_v26 = vpop.f32.mrb[24].mxu1 }
 0x16c   :  { %v1963_v27 = vpack.c.bf16 %v1334_v23, %v1333_v21  ;;  %v1200_v29 = vmul.f32 %v2455_v17, %v779_v25  ;;  %v1232_v30 = vmul.f32 %v2455_v17, %v907_v26  ;;  %v781_v31 = vpop.f32.mrb[25].mxu0  ;;  %v909_v32 = vpop.f32.mrb[25].mxu1 }
 0x16d   :  { %v2043_v28 = vpack.c.bf16 %v1366_v24, %v1365_v22  ;;  %v782_v33 = vpop.f32.mrb[26].mxu0  ;;  %v910_v34 = vpop.f32.mrb[26].mxu1 }
 0x16e   :  { %2099 = vst [vmem:[#allocation8 + $0x28] sm:$0xff] %v1963_v27   ;;  %v1271_v35 = vadd.f32 %v2460_v19, %v1200_v29  ;;  %v1303_v36 = vadd.f32 %v2460_v19, %v1232_v30  ;;  %v1201_v37 = vmul.f32 %v2455_v17, %v782_v33  ;;  %v1233_v38 = vmul.f32 %v2455_v17, %v910_v34  ;;  %v784_v39 = vpop.f32.mrb[27].mxu0  ;;  %v912_v40 = vpop.f32.mrb[27].mxu1 }
 0x16f   :  { %2115 = vst [vmem:[#allocation8 + $0xa8] sm:$0xff] %v2043_v28  }
 0x170   :  { %v1272_v41 = vadd.f32 %v2460_v19, %v1201_v37  ;;  %v1304_v42 = vadd.f32 %v2460_v19, %v1233_v38  ;;  %v1335_v43 = vmax.f32 %v1271_v35, 0.0  ;;  %v1367_v44 = vmax.f32 %v1303_v36, 0.0 }
 0x172   :  { %v1336_v45 = vmax.f32 %v1272_v41, 0.0  ;;  %v1368_v46 = vmax.f32 %v1304_v42, 0.0 }
 0x173   :  { %v787_v47 = vpop.f32.mrb[28].mxu0  ;;  %v915_v48 = vpop.f32.mrb[28].mxu1 }
 0x174   :  { %v1968_v49 = vpack.c.bf16 %v1336_v45, %v1335_v43  ;;  %v2048_v50 = vpack.c.bf16 %v1368_v46, %v1367_v44  ;;  %v1202_v51 = vmul.f32 %v2455_v17, %v787_v47  ;;  %v1234_v52 = vmul.f32 %v2455_v17, %v915_v48  ;;  %v789_v53 = vpop.f32.mrb[29].mxu0  ;;  %v917_v54 = vpop.f32.mrb[29].mxu1 }
 0x175   :  { %v790_v55 = vpop.f32.mrb[30].mxu0  ;;  %v918_v56 = vpop.f32.mrb[30].mxu1 }
 0x176   :  { %2100 = vst [vmem:[#allocation8 + $0x30] sm:$0xff] %v1968_v49   ;;  %2116 = vst [vmem:[#allocation8 + $0xb0] sm:$0xff] %v2048_v50   ;;  %v1273_v57 = vadd.f32 %v2460_v19, %v1202_v51  ;;  %v1305_v58 = vadd.f32 %v2460_v19, %v1234_v52  ;;  %v1203_v59 = vmul.f32 %v2455_v17, %v790_v55  ;;  %v792_v61 = vpop.f32.mrb[31].mxu0  ;;  %v920_v62 = vpop.f32.mrb[31].mxu1 }
 0x177   :  { %v1235_v60 = vmul.f32 %v2455_v17, %v918_v56 }
 0x178   :  { %v1274_v63 = vadd.f32 %v2460_v19, %v1203_v59  ;;  %v1337_v1 = vmax.f32 %v1273_v57, 0.0  ;;  %v1369_v2 = vmax.f32 %v1305_v58, 0.0 }
 0x179   :  { %v1306_v0 = vadd.f32 %v2460_v19, %v1235_v60 }
 0x17a   :  { %v1338_v3 = vmax.f32 %v1274_v63, 0.0 }
 0x17b   :  { %v1370_v4 = vmax.f32 %v1306_v0, 0.0  ;;  %v795_v5 = vpop.f32.mrb[32].mxu0  ;;  %v923_v6 = vpop.f32.mrb[32].mxu1 }
 0x17c   :  { %v1973_v7 = vpack.c.bf16 %v1338_v3, %v1337_v1  ;;  %v1204_v9 = vmul.f32 %v2455_v17, %v795_v5  ;;  %v1236_v10 = vmul.f32 %v2455_v17, %v923_v6  ;;  %v797_v11 = vpop.f32.mrb[33].mxu0  ;;  %v925_v12 = vpop.f32.mrb[33].mxu1 }
 0x17d   :  { %v2053_v8 = vpack.c.bf16 %v1370_v4, %v1369_v2  ;;  %v798_v13 = vpop.f32.mrb[34].mxu0  ;;  %v926_v14 = vpop.f32.mrb[34].mxu1 }
 0x17e   :  { %2101 = vst [vmem:[#allocation8 + $0x38] sm:$0xff] %v1973_v7   ;;  %v1275_v15 = vadd.f32 %v2460_v19, %v1204_v9  ;;  %v1307_v16 = vadd.f32 %v2460_v19, %v1236_v10  ;;  %v1205_v18 = vmul.f32 %v2455_v17, %v798_v13  ;;  %v1237_v20 = vmul.f32 %v2455_v17, %v926_v14  ;;  %v800_v21 = vpop.f32.mrb[35].mxu0  ;;  %v928_v22 = vpop.f32.mrb[35].mxu1 }
 0x17f   :  { %2117 = vst [vmem:[#allocation8 + $0xb8] sm:$0xff] %v2053_v8  }
 0x180   :  { %v1276_v23 = vadd.f32 %v2460_v19, %v1205_v18  ;;  %v1308_v24 = vadd.f32 %v2460_v19, %v1237_v20  ;;  %v1339_v25 = vmax.f32 %v1275_v15, 0.0  ;;  %v1371_v26 = vmax.f32 %v1307_v16, 0.0 }
 0x182   :  { %v1340_v27 = vmax.f32 %v1276_v23, 0.0  ;;  %v1372_v28 = vmax.f32 %v1308_v24, 0.0 }
 0x183   :  { %v803_v29 = vpop.f32.mrb[36].mxu0  ;;  %v931_v30 = vpop.f32.mrb[36].mxu1 }
 0x184   :  { %v1978_v31 = vpack.c.bf16 %v1340_v27, %v1339_v25  ;;  %v2058_v32 = vpack.c.bf16 %v1372_v28, %v1371_v26  ;;  %v1206_v33 = vmul.f32 %v2455_v17, %v803_v29  ;;  %v1238_v34 = vmul.f32 %v2455_v17, %v931_v30  ;;  %v805_v35 = vpop.f32.mrb[37].mxu0  ;;  %v933_v36 = vpop.f32.mrb[37].mxu1 }
 0x185   :  { %v806_v37 = vpop.f32.mrb[38].mxu0  ;;  %v934_v38 = vpop.f32.mrb[38].mxu1 }
 0x186   :  { %2102 = vst [vmem:[#allocation8 + $0x40] sm:$0xff] %v1978_v31   ;;  %2118 = vst [vmem:[#allocation8 + $0xc0] sm:$0xff] %v2058_v32   ;;  %v1277_v39 = vadd.f32 %v2460_v19, %v1206_v33  ;;  %v1309_v40 = vadd.f32 %v2460_v19, %v1238_v34  ;;  %v1207_v41 = vmul.f32 %v2455_v17, %v806_v37  ;;  %v808_v43 = vpop.f32.mrb[39].mxu0  ;;  %v936_v44 = vpop.f32.mrb[39].mxu1 }
 0x187   :  { %v1239_v42 = vmul.f32 %v2455_v17, %v934_v38 }
 0x188   :  { %v1278_v45 = vadd.f32 %v2460_v19, %v1207_v41  ;;  %v1341_v47 = vmax.f32 %v1277_v39, 0.0  ;;  %v1373_v48 = vmax.f32 %v1309_v40, 0.0 }
 0x189   :  { %v1310_v46 = vadd.f32 %v2460_v19, %v1239_v42 }
 0x18a   :  { %v1342_v49 = vmax.f32 %v1278_v45, 0.0 }
 0x18b   :  { %v1374_v50 = vmax.f32 %v1310_v46, 0.0  ;;  %v811_v51 = vpop.f32.mrb[40].mxu0  ;;  %v939_v52 = vpop.f32.mrb[40].mxu1 }
 0x18c   :  { %v1983_v53 = vpack.c.bf16 %v1342_v49, %v1341_v47  ;;  %v1208_v55 = vmul.f32 %v2455_v17, %v811_v51  ;;  %v1240_v56 = vmul.f32 %v2455_v17, %v939_v52  ;;  %v813_v57 = vpop.f32.mrb[41].mxu0  ;;  %v941_v58 = vpop.f32.mrb[41].mxu1 }
 0x18d   :  { %v2063_v54 = vpack.c.bf16 %v1374_v50, %v1373_v48  ;;  %v814_v59 = vpop.f32.mrb[42].mxu0  ;;  %v942_v60 = vpop.f32.mrb[42].mxu1 }
 0x18e   :  { %2103 = vst [vmem:[#allocation8 + $0x48] sm:$0xff] %v1983_v53   ;;  %v1279_v61 = vadd.f32 %v2460_v19, %v1208_v55  ;;  %v1311_v62 = vadd.f32 %v2460_v19, %v1240_v56  ;;  %v1209_v63 = vmul.f32 %v2455_v17, %v814_v59  ;;  %v1241_v0 = vmul.f32 %v2455_v17, %v942_v60  ;;  %v816_v1 = vpop.f32.mrb[43].mxu0  ;;  %v944_v2 = vpop.f32.mrb[43].mxu1 }
 0x18f   :  { %2119 = vst [vmem:[#allocation8 + $0xc8] sm:$0xff] %v2063_v54  }
 0x190   :  { %v1280_v3 = vadd.f32 %v2460_v19, %v1209_v63  ;;  %v1312_v4 = vadd.f32 %v2460_v19, %v1241_v0  ;;  %v1343_v5 = vmax.f32 %v1279_v61, 0.0  ;;  %v1375_v6 = vmax.f32 %v1311_v62, 0.0 }
 0x192   :  { %v1344_v7 = vmax.f32 %v1280_v3, 0.0  ;;  %v1376_v8 = vmax.f32 %v1312_v4, 0.0 }
 0x193   :  { %v819_v9 = vpop.f32.mrb[44].mxu0  ;;  %v947_v10 = vpop.f32.mrb[44].mxu1 }
 0x194   :  { %v1988_v11 = vpack.c.bf16 %v1344_v7, %v1343_v5  ;;  %v2068_v12 = vpack.c.bf16 %v1376_v8, %v1375_v6  ;;  %v1210_v13 = vmul.f32 %v2455_v17, %v819_v9  ;;  %v1242_v14 = vmul.f32 %v2455_v17, %v947_v10  ;;  %v821_v15 = vpop.f32.mrb[45].mxu0  ;;  %v949_v16 = vpop.f32.mrb[45].mxu1 }
 0x195   :  { %v822_v18 = vpop.f32.mrb[46].mxu0  ;;  %v950_v20 = vpop.f32.mrb[46].mxu1 }
 0x196   :  { %2104 = vst [vmem:[#allocation8 + $0x50] sm:$0xff] %v1988_v11   ;;  %2120 = vst [vmem:[#allocation8 + $0xd0] sm:$0xff] %v2068_v12   ;;  %v1281_v21 = vadd.f32 %v2460_v19, %v1210_v13  ;;  %v1313_v22 = vadd.f32 %v2460_v19, %v1242_v14  ;;  %v1211_v23 = vmul.f32 %v2455_v17, %v822_v18  ;;  %v824_v25 = vpop.f32.mrb[47].mxu0  ;;  %v952_v26 = vpop.f32.mrb[47].mxu1 }
 0x197   :  { %v1243_v24 = vmul.f32 %v2455_v17, %v950_v20 }
 0x198   :  { %v1282_v27 = vadd.f32 %v2460_v19, %v1211_v23  ;;  %v1345_v29 = vmax.f32 %v1281_v21, 0.0  ;;  %v1377_v30 = vmax.f32 %v1313_v22, 0.0 }
 0x199   :  { %v1314_v28 = vadd.f32 %v2460_v19, %v1243_v24 }
 0x19a   :  { %v1346_v31 = vmax.f32 %v1282_v27, 0.0 }
 0x19b   :  { %v1378_v32 = vmax.f32 %v1314_v28, 0.0  ;;  %v827_v33 = vpop.f32.mrb[48].mxu0  ;;  %v955_v34 = vpop.f32.mrb[48].mxu1 }
 0x19c   :  { %v1993_v35 = vpack.c.bf16 %v1346_v31, %v1345_v29  ;;  %v1212_v37 = vmul.f32 %v2455_v17, %v827_v33  ;;  %v1244_v38 = vmul.f32 %v2455_v17, %v955_v34  ;;  %v829_v39 = vpop.f32.mrb[49].mxu0  ;;  %v957_v40 = vpop.f32.mrb[49].mxu1 }
 0x19d   :  { %v2073_v36 = vpack.c.bf16 %v1378_v32, %v1377_v30  ;;  %v830_v41 = vpop.f32.mrb[50].mxu0  ;;  %v958_v42 = vpop.f32.mrb[50].mxu1 }
 0x19e   :  { %2105 = vst [vmem:[#allocation8 + $0x58] sm:$0xff] %v1993_v35   ;;  %v1283_v43 = vadd.f32 %v2460_v19, %v1212_v37  ;;  %v1315_v44 = vadd.f32 %v2460_v19, %v1244_v38  ;;  %v1213_v45 = vmul.f32 %v2455_v17, %v830_v41  ;;  %v1245_v46 = vmul.f32 %v2455_v17, %v958_v42  ;;  %v832_v47 = vpop.f32.mrb[51].mxu0  ;;  %v960_v48 = vpop.f32.mrb[51].mxu1 }
 0x19f   :  { %2121 = vst [vmem:[#allocation8 + $0xd8] sm:$0xff] %v2073_v36  }
 0x1a0   :  { %v1284_v49 = vadd.f32 %v2460_v19, %v1213_v45  ;;  %v1316_v50 = vadd.f32 %v2460_v19, %v1245_v46  ;;  %v1347_v51 = vmax.f32 %v1283_v43, 0.0  ;;  %v1379_v52 = vmax.f32 %v1315_v44, 0.0 }
 0x1a2   :  { %v1348_v53 = vmax.f32 %v1284_v49, 0.0  ;;  %v1380_v54 = vmax.f32 %v1316_v50, 0.0 }
 0x1a3   :  { %v835_v55 = vpop.f32.mrb[52].mxu0  ;;  %v963_v56 = vpop.f32.mrb[52].mxu1 }
 0x1a4   :  { %v1998_v57 = vpack.c.bf16 %v1348_v53, %v1347_v51  ;;  %v2078_v58 = vpack.c.bf16 %v1380_v54, %v1379_v52  ;;  %v1214_v59 = vmul.f32 %v2455_v17, %v835_v55  ;;  %v1246_v60 = vmul.f32 %v2455_v17, %v963_v56  ;;  %v837_v61 = vpop.f32.mrb[53].mxu0  ;;  %v965_v62 = vpop.f32.mrb[53].mxu1 }
 0x1a5   :  { %v838_v63 = vpop.f32.mrb[54].mxu0  ;;  %v966_v0 = vpop.f32.mrb[54].mxu1 }
 0x1a6   :  { %2106 = vst [vmem:[#allocation8 + $0x60] sm:$0xff] %v1998_v57   ;;  %2122 = vst [vmem:[#allocation8 + $0xe0] sm:$0xff] %v2078_v58   ;;  %v1285_v1 = vadd.f32 %v2460_v19, %v1214_v59  ;;  %v1317_v2 = vadd.f32 %v2460_v19, %v1246_v60  ;;  %v1215_v3 = vmul.f32 %v2455_v17, %v838_v63  ;;  %v840_v5 = vpop.f32.mrb[55].mxu0  ;;  %v968_v6 = vpop.f32.mrb[55].mxu1 }
 0x1a7   :  { %v1247_v4 = vmul.f32 %v2455_v17, %v966_v0 }
 0x1a8   :  { %v1286_v7 = vadd.f32 %v2460_v19, %v1215_v3  ;;  %v1349_v9 = vmax.f32 %v1285_v1, 0.0  ;;  %v1381_v10 = vmax.f32 %v1317_v2, 0.0 }
 0x1a9   :  { %v1318_v8 = vadd.f32 %v2460_v19, %v1247_v4 }
 0x1aa   :  { %v1350_v11 = vmax.f32 %v1286_v7, 0.0 }
 0x1ab   :  { %v1382_v12 = vmax.f32 %v1318_v8, 0.0  ;;  %v843_v13 = vpop.f32.mrb[56].mxu0  ;;  %v971_v14 = vpop.f32.mrb[56].mxu1 }
 0x1ac   :  { %v2003_v15 = vpack.c.bf16 %v1350_v11, %v1349_v9  ;;  %v1216_v18 = vmul.f32 %v2455_v17, %v843_v13  ;;  %v1248_v20 = vmul.f32 %v2455_v17, %v971_v14  ;;  %v845_v21 = vpop.f32.mrb[57].mxu0  ;;  %v973_v22 = vpop.f32.mrb[57].mxu1 }
 0x1ad   :  { %v2083_v16 = vpack.c.bf16 %v1382_v12, %v1381_v10  ;;  %v846_v23 = vpop.f32.mrb[58].mxu0  ;;  %v974_v24 = vpop.f32.mrb[58].mxu1 }
 0x1ae   :  { %2107 = vst [vmem:[#allocation8 + $0x68] sm:$0xff] %v2003_v15   ;;  %v1287_v25 = vadd.f32 %v2460_v19, %v1216_v18  ;;  %v1319_v26 = vadd.f32 %v2460_v19, %v1248_v20  ;;  %v1217_v27 = vmul.f32 %v2455_v17, %v846_v23  ;;  %v1249_v28 = vmul.f32 %v2455_v17, %v974_v24  ;;  %v848_v29 = vpop.f32.mrb[59].mxu0  ;;  %v976_v30 = vpop.f32.mrb[59].mxu1 }
 0x1af   :  { %2123 = vst [vmem:[#allocation8 + $0xe8] sm:$0xff] %v2083_v16  }
 0x1b0   :  { %v1288_v31 = vadd.f32 %v2460_v19, %v1217_v27  ;;  %v1320_v32 = vadd.f32 %v2460_v19, %v1249_v28  ;;  %v1351_v33 = vmax.f32 %v1287_v25, 0.0  ;;  %v1383_v34 = vmax.f32 %v1319_v26, 0.0 }
 0x1b2   :  { %v1352_v35 = vmax.f32 %v1288_v31, 0.0  ;;  %v1384_v36 = vmax.f32 %v1320_v32, 0.0 }
 0x1b3   :  { %v851_v37 = vpop.f32.mrb[60].mxu0  ;;  %v979_v38 = vpop.f32.mrb[60].mxu1 }
 0x1b4   :  { %v2008_v39 = vpack.c.bf16 %v1352_v35, %v1351_v33  ;;  %v2088_v40 = vpack.c.bf16 %v1384_v36, %v1383_v34  ;;  %v1218_v41 = vmul.f32 %v2455_v17, %v851_v37  ;;  %v1250_v42 = vmul.f32 %v2455_v17, %v979_v38  ;;  %v853_v43 = vpop.f32.mrb[61].mxu0  ;;  %v981_v44 = vpop.f32.mrb[61].mxu1 }
 0x1b5   :  { %v854_v45 = vpop.f32.mrb[62].mxu0  ;;  %v982_v46 = vpop.f32.mrb[62].mxu1 }
 0x1b6   :  { %2108 = vst [vmem:[#allocation8 + $0x70] sm:$0xff] %v2008_v39   ;;  %2124 = vst [vmem:[#allocation8 + $0xf0] sm:$0xff] %v2088_v40   ;;  %v1289_v47 = vadd.f32 %v2460_v19, %v1218_v41  ;;  %v1321_v48 = vadd.f32 %v2460_v19, %v1250_v42  ;;  %v1219_v49 = vmul.f32 %v2455_v17, %v854_v45  ;;  %v856_v51 = vpop.f32.mrb[63].mxu0  ;;  %v984_v52 = vpop.f32.mrb[63].mxu1 }
 0x1b7   :  { %v1251_v50 = vmul.f32 %v2455_v17, %v982_v46 }
 0x1b8   :  { %v1290_v53 = vadd.f32 %v2460_v19, %v1219_v49  ;;  %v1353_v55 = vmax.f32 %v1289_v47, 0.0  ;;  %v1385_v56 = vmax.f32 %v1321_v48, 0.0 }
 0x1b9   :  { %v1322_v54 = vadd.f32 %v2460_v19, %v1251_v50 }
 0x1ba   :  { %v1354_v57 = vmax.f32 %v1290_v53, 0.0 }
 0x1bb   :  { %v1386_v58 = vmax.f32 %v1322_v54, 0.0 }
 0x1bc   :  { %v2013_v59 = vpack.c.bf16 %v1354_v57, %v1353_v55 }
 0x1bd   :  { %v2093_v60 = vpack.c.bf16 %v1386_v58, %v1385_v56 }
 0x1be   :  { %2109 = vst [vmem:[#allocation8 + $0x78] sm:$0xff] %v2013_v59  }
 0x1bf   :  { %2125 = vst [vmem:[#allocation8 + $0xf8] sm:$0xff] %v2093_v60  }
 0x1c0   :  { %2333 = shalt.err (!%p2330_p6)
}
 0x1c1   :  { %s2334_s26 = scalar_lea.hbm %s2611_s6, 4096 }
 0x1c2   :  { %p2335_p7 = scmp.ne.s32.totalorder %s2611_s6, %s2334_s26  ;;  %p2338_p8 = scmp.lt.u32.totalorder %s2334_s26, %s2611_s6 }
 0x1c4   :  { %p2340_p9 = pnand %p2338_p8, %p2335_p7 }
 0x1c6   :  { %2343 = shalt.err (!%p2340_p9)
}
 0x1c7   :  { %1718 = dma.vmem_to_hbm [thread:$0]  %s1713_s5, 4096, %s2611_s6, [#allocation5], %s2354_s0, %s2354_s0, %s2355_s19  }
 0x1c8   :  { %2348 = dma.done.wait [#allocation5], 4096  }
 0x1c9   :  { %2349 = vsyncadd [#allocation5], 4294963200 }
 0x1ca   :  { %1722 = vsyncpa [#allocation4], 1 }
 0x1cb   :  { %1723 = vsyncpa [#allocation7], 1 }
 0x1cc   :  { %1724 = vsyncpa [#allocation5], 1 }

</bundles_post_ra>
